<compile_context>
chip_gen: v5e
topology: v5e:2x2
jax: 0.10.0
libtpu: 0.0.40
codegen_flags: <defaults>
</compile_context>

<pallas_src>
import functools

import jax
import jax.numpy as jnp
from jax.experimental import pallas as pl
from jax.experimental.pallas import tpu as pltpu


def _round_up(x: int, m: int) -> int:
    return ((x + m - 1) // m) * m


def _stats_kernel(x_ref, sumx_ref, xtx_ref, *, n_rows, tn, tiles_per_split,
                  need_mask):
    """Accumulate batch sufficient statistics over the (split, tile) grid.

    sumx (1, D)  += sum_rows(x_tile)
    xtx  (D, D)  += x_tile^T @ x_tile   (MXU, contraction over batch axis)

    Output blocks have a per-split constant index_map -> resident f32
    accumulators across the inner ("arbitrary") grid axis; the leading
    "parallel" split axis lets v7x's two TensorCores each own a partial sum.
    """
    @pl.when(pl.program_id(1) == 0)
    def _():
        sumx_ref[...] = jnp.zeros_like(sumx_ref)
        xtx_ref[...] = jnp.zeros_like(xtx_ref)

    x = x_ref[...].astype(jnp.float32)
    if need_mask:
        # Ragged last tile: rows past N (stale VMEM / clipped DMA) must not
        # contribute to the statistics.
        tile = pl.program_id(0) * tiles_per_split + pl.program_id(1)
        rows = jax.lax.broadcasted_iota(jnp.int32, x.shape, 0) + tile * tn
        x = jnp.where(rows < n_rows, x, 0.0)

    sumx_ref[...] += jnp.sum(x, axis=0, keepdims=True)
    xtx_ref[...] += jax.lax.dot_general(
        x, x,
        dimension_numbers=(((0,), (0,)), ((), ())),
        preferred_element_type=jnp.float32,
    )


def _whiten_kernel(x_ref, wt_ref, b_ref, out_ref):
    """out = x @ W^T - b,  with b = mean @ W^T (mean folded into a bias).

    Garbage rows of a ragged last tile only produce garbage output rows, and
    the boundary store is clipped to the real array extent, so no mask needed.
    """
    x = x_ref[...].astype(jnp.float32)
    out_ref[...] = jax.lax.dot_general(
        x, wt_ref[...],
        dimension_numbers=(((1,), (0,)), ((), ())),   # [TN, D] @ [D, D]
        preferred_element_type=jnp.float32,
    ) - b_ref[...]


def whitening2d(x: jax.Array, output_dim: int, eps: float = 0.0) -> jax.Array:
    """JAX/Pallas equivalent of Whitening2d.forward.  x: (N, output_dim)."""
    n, d = x.shape
    assert d == output_dim and n >= 2

    # custom_fwd(cast_inputs=f32): bf16/f16 -> f32 casts are value-exact, so we
    # keep half-precision inputs at native width in HBM and upcast in-kernel
    # (halves the streamed bytes); anything else is cast to f32 up front.
    if x.dtype not in (jnp.float32, jnp.bfloat16, jnp.float16):
        x = x.astype(jnp.float32)

    # ---- Per-generation VMEM budget (v5e/v6e: 128 MiB phys, v7x: 64 MiB) ----
    try:
        vmem_cap = int(pltpu.get_tpu_info().vmem_capacity_bytes)
    except Exception:
        vmem_cap = 64 * 1024 * 1024
    vmem_limit = min((vmem_cap * 3) // 4, 100 * 1024 * 1024)   # ~48 / ~96 MiB

    # ---- Batch tile size: ~8 MiB x-slab, bounded by the real VMEM budget ----
    itemsize = x.dtype.itemsize
    row_in_bytes = d * itemsize                 # streamed x row
    row_out_bytes = d * 4                       # f32 output row (whiten pass)
    resident_bytes = 2 * (d * d * 4 + d * 4)    # double-buffered W^T + bias
    budget = (vmem_limit * 4) // 5 - resident_bytes
    fit_rows = max(budget // (2 * (row_in_bytes + row_out_bytes)), 8)
    target_rows = max((8 * 1024 * 1024) // row_in_bytes, 8)
    tn = min(int(fit_rows), int(target_rows), _round_up(n, 8))
    tn = max((tn // 8) * 8, 8)

    num_tiles = pl.cdiv(n, tn)
    need_mask = (n % tn) != 0
    # Split the stats reduction across a leading "parallel" axis (two
    # TensorCores on v7x) when it divides evenly, so no grid point ever maps
    # to a fully out-of-bounds block.
    if num_tiles >= 2 and num_tiles % 2 == 0:
        num_splits, tiles_per_split = 2, num_tiles // 2
    else:
        num_splits, tiles_per_split = 1, num_tiles

    # ---- Pallas kernel 1: streaming reduction for sum_x and x^T x -----------
    sum_parts, xtx_parts = pl.pallas_call(
        functools.partial(_stats_kernel, n_rows=n, tn=tn,
                          tiles_per_split=tiles_per_split, need_mask=need_mask),
        out_shape=(
            jax.ShapeDtypeStruct((num_splits, 1, d), jnp.float32),
            jax.ShapeDtypeStruct((num_splits, d, d), jnp.float32),
        ),
        grid=(num_splits, tiles_per_split),
        in_specs=[pl.BlockSpec((tn, d),
                               lambda c, i: (c * tiles_per_split + i, 0))],
        out_specs=(
            pl.BlockSpec((None, 1, d), lambda c, i: (c, 0, 0)),
            pl.BlockSpec((None, d, d), lambda c, i: (c, 0, 0)),
        ),
        compiler_params=pltpu.CompilerParams(
            dimension_semantics=("parallel", "arbitrary"),
            vmem_limit_bytes=vmem_limit,
        ),
    )(x)

    # ---- Plain-JAX glue: cov, shrinkage, Cholesky, triangular solve ---------
    # TODO(synk): Cholesky / triangular solve (small D x D) have no Pallas
    # primitive; done with XLA linalg.  With eps=0.0 a rank-deficient batch
    # (N <= D) gives a non-PD covariance and NaNs, same as the PyTorch module.
    # NOTE: cov uses the one-pass formula (xtx - N*mean^T mean)/(N-1); it is
    # algebraically equal to the reference's centered form but can lose
    # precision if |mean| >> std (fine for roughly zero-mean projector feats).
    sum_x = jnp.sum(sum_parts, axis=0)                          # (1, D)
    xtx = jnp.sum(xtx_parts, axis=0)                            # (D, D)
    mean = sum_x * (1.0 / n)                                    # (1, D)
    f_cov = (xtx - n * (mean.T @ mean)) * (1.0 / (n - 1))       # (D, D)

    eye = jnp.eye(d, dtype=jnp.float32)
    f_cov_shrinked = (1.0 - eps) * f_cov + eps * eye
    chol = jnp.linalg.cholesky(f_cov_shrinked)
    # torch.triangular_solve(eye, L, upper=False)[0] == L^{-1}
    inv_sqrt = jax.scipy.linalg.solve_triangular(chol, eye, lower=True)

    # Pre-transpose W outside the kernel (paid once; W is resident in-kernel)
    # and fold the mean subtraction into a bias.
    w_t = inv_sqrt.T                                            # (D, D)
    bias = mean @ inv_sqrt.T                                    # (1, D)

    # ---- Pallas kernel 2: streaming whitening matmul (the 1x1 conv2d) -------
    out = pl.pallas_call(
        _whiten_kernel,
        out_shape=jax.ShapeDtypeStruct((n, d), jnp.float32),
        grid=(num_tiles,),
        in_specs=[
            pl.BlockSpec((tn, d), lambda i: (i, 0)),
            pl.BlockSpec((d, d), lambda i: (0, 0)),   # resident W^T
            pl.BlockSpec((1, d), lambda i: (0, 0)),   # resident bias
        ],
        out_specs=pl.BlockSpec((tn, d), lambda i: (i, 0)),
        compiler_params=pltpu.CompilerParams(
            dimension_semantics=("parallel",),   # shard batch across v7x cores
            vmem_limit_bytes=vmem_limit,
        ),
    )(x, w_t, bias)

    return out


if __name__ == "__main__":
    # Small deterministic example: batch=64 samples, output_dim=32 features.
    # (batch > output_dim so the sample covariance is PD with eps=0.0, matching
    #  the module's default eps.)
    N, D = 64, 32
    key = jax.random.PRNGKey(0)
    x = jax.random.normal(key, (N, D), dtype=jnp.float32)

    y = whitening2d(x, output_dim=D, eps=0.0)
    y = jax.block_until_ready(y)

    assert y.shape == (N, D) and y.dtype == jnp.float32

    # Sanity check 1: whitened features should have ~identity covariance.
    yc = y - jnp.mean(y, axis=0, keepdims=True)
    cov_w = (yc.T @ yc) / (N - 1)
    assert jnp.max(jnp.abs(cov_w - jnp.eye(D))) < 1e-3

    # Sanity check 2: match a plain-JAX reference of the PyTorch forward.
    m_ref = jnp.mean(x, axis=0, keepdims=True)
    xn_ref = x - m_ref
    cov_ref = (xn_ref.T @ xn_ref) / (N - 1)
    w_ref = jax.scipy.linalg.solve_triangular(
        jnp.linalg.cholesky(cov_ref), jnp.eye(D, dtype=jnp.float32), lower=True)
    y_ref = xn_ref @ w_ref.T
    assert jnp.max(jnp.abs(y - y_ref)) < 1e-2

    print("KERNEL_OK")
</pallas_src>

<mosaic_0001>
module attributes {stable_mosaic.version = 11 : i64} {
  func.func @_stats_kernel(%arg0: i32, %arg1: i32, %arg2: memref<64x32xf32, #tpu.memory_space<vmem>>, %arg3: memref<1x1x32xf32, #tpu.memory_space<vmem>>, %arg4: memref<1x32x32xf32, #tpu.memory_space<vmem>>) attributes {dimension_semantics = [#tpu.dimension_semantics<parallel>, #tpu.dimension_semantics<arbitrary>], iteration_bounds = array<i64: 1, 1>, scalar_prefetch = 0 : i64, scratch_operands = 0 : i64, tpu.core_type = #tpu.core_type<tc>, window_params = [{transform_indices = @transform_0, window_bounds = array<i64: 64, 32>}, {transform_indices = @transform_1, window_bounds = array<i64: 1, 1, 32>}, {transform_indices = @transform_2, window_bounds = array<i64: 1, 32, 32>}]} {
    %c0_i32 = arith.constant 0 : i32
    %0 = arith.cmpi eq, %arg1, %c0_i32 : i32
    %1 = arith.extui %0 : i1 to i32
    %c0_i32_0 = arith.constant 0 : i32
    %2 = arith.cmpi ne, %1, %c0_i32_0 : i32
    scf.if %2 {
      %cst_15 = arith.constant 0.000000e+00 : f32
      %19 = vector.broadcast %cst_15 : f32 to vector<1x32xf32>
      %c0_16 = arith.constant 0 : index
      %c0_17 = arith.constant 0 : index
      %c0_18 = arith.constant 0 : index
      %20 = vector.load %arg3[%c0_16, %c0_17, %c0_18] : memref<1x1x32xf32, #tpu.memory_space<vmem>>, vector<1x1x32xf32>
      %21 = vector.shape_cast %20 : vector<1x1x32xf32> to vector<1x32xf32>
      %22 = vector.shape_cast %19 : vector<1x32xf32> to vector<1x1x32xf32>
      tpu.vector_store %arg3[%c0_16, %c0_17, %c0_18], %22 {strides = array<i32>} : memref<1x1x32xf32, #tpu.memory_space<vmem>>, vector<1x1x32xf32>,
      %cst_19 = arith.constant 0.000000e+00 : f32
      %23 = vector.broadcast %cst_19 : f32 to vector<32x32xf32>
      %c0_20 = arith.constant 0 : index
      %c0_21 = arith.constant 0 : index
      %c0_22 = arith.constant 0 : index
      %24 = vector.load %arg4[%c0_20, %c0_21, %c0_22] : memref<1x32x32xf32, #tpu.memory_space<vmem>>, vector<1x32x32xf32>
      %25 = vector.shape_cast %24 : vector<1x32x32xf32> to vector<32x32xf32>
      %26 = vector.shape_cast %23 : vector<32x32xf32> to vector<1x32x32xf32>
      tpu.vector_store %arg4[%c0_20, %c0_21, %c0_22], %26 {strides = array<i32>} : memref<1x32x32xf32, #tpu.memory_space<vmem>>, vector<1x32x32xf32>,
    } else {
    }
    %c0 = arith.constant 0 : index
    %c0_1 = arith.constant 0 : index
    %3 = vector.load %arg2[%c0, %c0_1] : memref<64x32xf32, #tpu.memory_space<vmem>>, vector<64x32xf32>
    %c0_2 = arith.constant 0 : index
    %c0_3 = arith.constant 0 : index
    %c0_4 = arith.constant 0 : index
    %4 = vector.load %arg3[%c0_2, %c0_3, %c0_4] : memref<1x1x32xf32, #tpu.memory_space<vmem>>, vector<1x1x32xf32>
    %5 = vector.shape_cast %4 : vector<1x1x32xf32> to vector<1x32xf32>
    %cst = arith.constant dense<0.000000e+00> : vector<32xf32>
    %6 = vector.multi_reduction <add>, %3, %cst [0] : vector<64x32xf32> to vector<32xf32>
    %7 = vector.shape_cast %6 : vector<32xf32> to vector<1x32xf32>
    %8 = arith.addf %5, %7 : vector<1x32xf32>
    %c0_5 = arith.constant 0 : index
    %c0_6 = arith.constant 0 : index
    %c0_7 = arith.constant 0 : index
    %9 = vector.load %arg3[%c0_5, %c0_6, %c0_7] : memref<1x1x32xf32, #tpu.memory_space<vmem>>, vector<1x1x32xf32>
    %10 = vector.shape_cast %9 : vector<1x1x32xf32> to vector<1x32xf32>
    %11 = vector.shape_cast %8 : vector<1x32xf32> to vector<1x1x32xf32>
    tpu.vector_store %arg3[%c0_5, %c0_6, %c0_7], %11 {strides = array<i32>} : memref<1x1x32xf32, #tpu.memory_space<vmem>>, vector<1x1x32xf32>,
    %c0_8 = arith.constant 0 : index
    %c0_9 = arith.constant 0 : index
    %c0_10 = arith.constant 0 : index
    %12 = vector.load %arg4[%c0_8, %c0_9, %c0_10] : memref<1x32x32xf32, #tpu.memory_space<vmem>>, vector<1x32x32xf32>
    %13 = vector.shape_cast %12 : vector<1x32x32xf32> to vector<32x32xf32>
    %cst_11 = arith.constant dense<0.000000e+00> : vector<32x32xf32>
    %14 = tpu.matmul %3, %3, %cst_11 {dimension_numbers = #tpu.dot_dimension_numbers<[0], [0], [1], [1], [0, 1, 1, 1], [], []>} : vector<64x32xf32>, vector<64x32xf32>, vector<32x32xf32> -> vector<32x32xf32>
    %15 = arith.addf %13, %14 : vector<32x32xf32>
    %c0_12 = arith.constant 0 : index
    %c0_13 = arith.constant 0 : index
    %c0_14 = arith.constant 0 : index
    %16 = vector.load %arg4[%c0_12, %c0_13, %c0_14] : memref<1x32x32xf32, #tpu.memory_space<vmem>>, vector<1x32x32xf32>
    %17 = vector.shape_cast %16 : vector<1x32x32xf32> to vector<32x32xf32>
    %18 = vector.shape_cast %15 : vector<32x32xf32> to vector<1x32x32xf32>
    tpu.vector_store %arg4[%c0_12, %c0_13, %c0_14], %18 {strides = array<i32>} : memref<1x32x32xf32, #tpu.memory_space<vmem>>, vector<1x32x32xf32>,
    return
  }
  func.func @transform_0(%arg0: i32, %arg1: i32) -> (i32, i32) {
    %c1_i32 = arith.constant 1 : i32
    %0 = arith.muli %arg0, %c1_i32 : i32
    %1 = arith.addi %0, %arg1 : i32
    %c0_i32 = arith.constant 0 : i32
    %c0_i32_0 = arith.constant 0 : i32
    return %1, %c0_i32 : i32, i32
  }
  func.func @transform_1(%arg0: i32, %arg1: i32) -> (i32, i32, i32) {
    %c0_i32 = arith.constant 0 : i32
    %c0_i32_0 = arith.constant 0 : i32
    %c0_i32_1 = arith.constant 0 : i32
    return %arg0, %c0_i32, %c0_i32_0 : i32, i32, i32
  }
  func.func @transform_2(%arg0: i32, %arg1: i32) -> (i32, i32, i32) {
    %c0_i32 = arith.constant 0 : i32
    %c0_i32_0 = arith.constant 0 : i32
    %c0_i32_1 = arith.constant 0 : i32
    return %arg0, %c0_i32, %c0_i32_0 : i32, i32, i32
  }
}

</mosaic_0001>

<bundles_post_ra>
// kernel: tpu_custom_call.1
= control target key start
LH: loop header
LB: loop body
LE: loop exit
PB: predicated region body
PF: predicated region fallthrough
CT: control target
= control target key end

     0   :  { %8 = vsyncpa [#allocation3], 0  ;;  %vm40_vm0 = vcmask 261120   ;;  %s358_s0 = inlined_call_operand.vmem [shape: f32[64,32], index: 0, kind: input, shape index: {}]   ;;  %s359_s1 = inlined_call_operand.hbm [shape: f32[1,1,32], index: 1, kind: output, shape index: {0}]   ;;  %s360_s2 = inlined_call_operand.hbm [shape: f32[1,32,32], index: 2, kind: output, shape index: {1}]  }
   0x1   :  { %v45_v0 = vld [vmem:[%s358_s0] sm:$0xff]  ;;  %v46_v1 = vld [vmem:[%s358_s0 + $0x8] sm:$0xff]  ;;  %v47_v2 = vld [vmem:[%s358_s0 + $0x10] sm:$0xff] }
   0x2   :  { %83 = vxpose.xlu0.b32.start [1/8] (short) (narrow) %v45_v0, 32  ;;  %v55_v3 = vsel %vm40_vm0, %v45_v0, 0.0  ;;  %v56_v4 = vsel %vm40_vm0, %v46_v1, 0.0  ;;  %v58_v5 = vsel %vm40_vm0, %v47_v2, 0.0  ;;  %v48_v7 = vld [vmem:[%s358_s0 + $0x18] sm:$0xff] }
   0x3   :  { %v57_v6 = vadd.f32 %v56_v4, %v55_v3 }
   0x4   :  { %9 = vsyncpa [#allocation5], 0  ;;  %v60_v8 = vsel %vm40_vm0, %v48_v7, 0.0  ;;  %v49_v10 = vld [vmem:[%s358_s0 + $0x20] sm:$0xff]  ;;  %v50_v14 = vld [vmem:[%s358_s0 + $0x28] sm:$0xff]  ;;  %v290_v19 = vmov 0.0  }
   0x5   :  { %v59_v9 = vadd.f32 %v58_v5, %v57_v6  ;;  %v62_v11 = vsel %vm40_vm0, %v49_v10, 0.0  ;;  %v64_v15 = vsel %vm40_vm0, %v50_v14, 0.0  ;;  %v52_v17 = vld [vmem:[%s358_s0 + $0x38] sm:$0xff]  ;;  %v51_v18 = vld [vmem:[%s358_s0 + $0x30] sm:$0xff]  ;;  %41 = vst.msk [vmem:[#allocation4] sm:$0xff] %vm40_vm0, %v290_v19  ;;  %vm115_vm1 = vcmask 523264  }
   0x6   :  { %136 = vmatpush.msra.mxu0 %v52_v17  ;;  %209 = vmatpush.msra.mxu1 %v52_v17  ;;  %42 = vst.msk [vmem:[#allocation4 + $0x8] sm:$0xff] %vm40_vm0, %v290_v19  ;;  %v66_v24 = vsel %vm40_vm0, %v51_v18, 0.0  ;;  %v68_v26 = vsel %vm40_vm0, %v52_v17, 0.0  ;;  %vm38_vm2 = vcmask 253952   ;;  %s291_s0 = smov [#allocation2]   ;;  %s172_s28 = sshll.u32 %s359_s1, 4  ;;  %s173_s28 = int_to_ptr.hbm [resolvable:$true] %s172_s28 }
   0x7   :  { %v61_v12 = vadd.f32 %v60_v8, %v59_v9  ;;  %210 = vmatpush.msra.mxu2 %v52_v17  ;;  %211 = vmatpush.msra.mxu3 %v52_v17  ;;  %43 = vst.msk [vmem:[#allocation4 + $0x10] sm:$0xff] %vm40_vm0, %v290_v19  ;;  %s170_s25 = sshll.u32 %s291_s0, 4  ;;  %s292_s1 = smov [#allocation4]   ;;  %s171_s25 = int_to_ptr.vmem [resolvable:$true] %s170_s25 }
   0x8   :  { %137 = vmatpush.msra.mxu0 %v51_v18  ;;  %212 = vmatpush.msra.mxu1 %v51_v18  ;;  %44 = vst.msk [vmem:[#allocation4 + $0x18] sm:$0xff] %vm40_vm0, %v290_v19  ;;  %s180_s29 = sshll.u32 %s292_s1, 4  ;;  %s182_s4 = sshll.u32 %s360_s2, 4  ;;  %s181_s29 = int_to_ptr.vmem [resolvable:$true] %s180_s29  ;;  %s183_s4 = int_to_ptr.hbm [resolvable:$true] %s182_s4 }
   0x9   :  { %v63_v13 = vadd.f32 %v62_v11, %v61_v12  ;;  %213 = vmatpush.msra.mxu2 %v51_v18  ;;  %214 = vmatpush.msra.mxu3 %v51_v18  ;;  %39 = vst.msk [vmem:[#allocation2] sm:$0x1] %vm38_vm2, %v290_v19  ;;  %s293_s5 = smov 128   ;;  %s294_s6 = smov 8  }
   0xa   :  { %84 = vxpose.xlu0.b32.cont [2/8] (short) (narrow) %v46_v1, 32  ;;  %138 = vmatpush.msra.mxu0 %v50_v14 }
   0xb   :  { %v65_v16 = vadd.f32 %v64_v15, %v63_v13  ;;  %215 = vmatpush.msra.mxu1 %v50_v14  ;;  %216 = vmatpush.msra.mxu2 %v50_v14 }
   0xc   :  { %217 = vmatpush.msra.mxu3 %v50_v14  ;;  %139 = vmatpush.msra.mxu0 %v49_v10  ;;  %v79_v34 = vld [vmem:[#allocation4] sm:$0xff] }
   0xd   :  { %218 = vmatpush.msra.mxu1 %v49_v10  ;;  %219 = vmatpush.msra.mxu2 %v49_v10  ;;  %v67_v25 = vadd.f32 %v66_v24, %v65_v16  ;;  %v80_v39 = vld [vmem:[#allocation4 + $0x8] sm:$0xff] }
   0xe   :  { %140 = vmatpush.msra.mxu0 %v48_v7  ;;  %220 = vmatpush.msra.mxu3 %v49_v10  ;;  %v81_v42 = vld [vmem:[#allocation4 + $0x10] sm:$0xff] }
   0xf   :  { %221 = vmatpush.msra.mxu1 %v48_v7  ;;  %222 = vmatpush.msra.mxu2 %v48_v7  ;;  %v69_v27 = vadd.f32 %v68_v26, %v67_v25  ;;  %v82_v45 = vld [vmem:[#allocation4 + $0x18] sm:$0xff] }
  0x10   :  { %141 = vmatpush.msra.mxu0 %v47_v2  ;;  %223 = vmatpush.msra.mxu3 %v48_v7  ;;  %v53_v35 = vld [vmem:[#allocation2] sm:$0x1] }
  0x11   :  { %224 = vmatpush.msra.mxu1 %v47_v2  ;;  %225 = vmatpush.msra.mxu2 %v47_v2  ;;  %v70_v28 = vrot.slane %v69_v27, 4 }
  0x12   :  { %85 = vxpose.xlu0.b32.cont [3/8] (short) (narrow) %v47_v2, 32  ;;  %142 = vmatpush.msra.mxu0 %v46_v1 }
  0x13   :  { %227 = vmatpush.msra.mxu1 %v46_v1  ;;  %228 = vmatpush.msra.mxu2 %v46_v1  ;;  %v71_v29 = vadd.f32 %v70_v28, %v69_v27 }
  0x14   :  { %226 = vmatpush.msra.mxu3 %v47_v2  ;;  %143 = vmatpush.msra.mxu0 %v45_v0 }
  0x15   :  { %230 = vmatpush.msra.mxu1 %v45_v0  ;;  %231 = vmatpush.msra.mxu2 %v45_v0  ;;  %v72_v30 = vrot.slane %v71_v29, 2 }
  0x16   :  { %229 = vmatpush.msra.mxu3 %v46_v1 }
  0x17   :  { %v73_v31 = vadd.f32 %v72_v30, %v71_v29 }
  0x18   :  { %232 = vmatpush.msra.mxu3 %v45_v0 }
  0x19   :  { %v74_v32 = vrot.slane %v73_v31, 1 }
  0x1a   :  { %86 = vxpose.xlu0.b32.cont [4/8] (short) (narrow) %v48_v7, 32 }
  0x1b   :  { %v75_v33 = vadd.f32 %v74_v32, %v73_v31 }
  0x1d   :  { %v76_v36 = vadd.f32 %v75_v33, %v53_v35 }
  0x1f   :  { %78 = vst.msk [vmem:[#allocation2] sm:$0x1] %vm38_vm2, %v76_v36 }
  0x20   :  { %175 = dma.vmem_to_hbm [thread:$0]  %s171_s25, 16, %s173_s28, [#allocation3]  }
  0x22   :  { %87 = vxpose.xlu0.b32.cont [5/8] (short) (narrow) %v49_v10, 32 }
  0x2a   :  { %88 = vxpose.xlu0.b32.cont [6/8] (short) (narrow) %v50_v14, 32 }
  0x32   :  { %89 = vxpose.xlu0.b32.cont [7/8] (short) (narrow) %v51_v18, 32 }
  0x3a   :  { %90 = vxpose.xlu0.b32.end [8/8] (short) (narrow) %v52_v17, 32 }
  0xa6   :  { %v99_v20 = vpop.trf.xlu0 }
  0xa7   :  { %205 = vmatmul.msk.f32.vlgmr.msra.gmra.mxu0 %vm115_vm1, %v99_v20 }
  0xae   :  { %v100_v21 = vpop.trf.xlu0 }
  0xaf   :  { %206 = vmatmul.msk.f32.vlgmr.msra.gmra.mxu1 %vm115_vm1, %v100_v21 }
  0xb6   :  { %v101_v22 = vpop.trf.xlu0 }
  0xb7   :  { %207 = vmatmul.msk.f32.vlgmr.msra.gmra.mxu2 %vm115_vm1, %v101_v22 }
  0xbe   :  { %v102_v23 = vpop.trf.xlu0 }
  0xbf   :  { %208 = vmatmul.msk.f32.vlgmr.msra.gmra.mxu3 %vm115_vm1, %v102_v23 }
 0x124   :  { %v145_v37 = vpop.f32.mrf.mxu0 }
 0x125   :  { %v157_v38 = vadd.f32 %v145_v37, %v79_v34 }
 0x127   :  { %161 = vst.msk [vmem:[#allocation4] sm:$0xff] %vm40_vm0, %v157_v38 }
 0x12c   :  { %v148_v40 = vpop.f32.mrf.mxu1 }
 0x12d   :  { %v158_v41 = vadd.f32 %v148_v40, %v80_v39 }
 0x12f   :  { %162 = vst.msk [vmem:[#allocation4 + $0x8] sm:$0xff] %vm40_vm0, %v158_v41 }
 0x13a   :  { %v151_v43 = vpop.f32.mrf.mxu2 }
 0x13b   :  { %v159_v44 = vadd.f32 %v151_v43, %v81_v42 }
 0x13d   :  { %163 = vst.msk [vmem:[#allocation4 + $0x10] sm:$0xff] %vm40_vm0, %v159_v44 }
 0x142   :  { %v154_v46 = vpop.f32.mrf.mxu3 }
 0x143   :  { %v160_v47 = vadd.f32 %v154_v46, %v82_v45 }
 0x145   :  { %164 = vst.msk [vmem:[#allocation4 + $0x18] sm:$0xff] %vm40_vm0, %v160_v47 }
 0x146   :  { %188 = dma.vmem_to_hbm [thread:$0]  %s181_s29, 512, %s183_s4, [#allocation5], %s293_s5, %s293_s5, %s294_s6  }
 0x147   :  { %286 = dma.done.wait [#allocation3], 16  }
 0x148   :  { %287 = vsyncadd [#allocation3], 4294967280 }
 0x149   :  { %288 = dma.done.wait [#allocation5], 512  }
 0x14a   :  { %289 = vsyncadd [#allocation5], 4294966784 }
 0x14b   :  { %197 = vsyncpa [#allocation3], 1 }
 0x14c   :  { %198 = vsyncpa [#allocation5], 1 }

</bundles_post_ra>
